<compile_context>
chip_gen: v7x
topology: tpu7x:2x2x1
jax: 0.10.0
libtpu: 0.0.40
codegen_flags: <defaults>
</compile_context>

<pallas_src>
import functools

import jax
import jax.numpy as jnp
from jax import lax
from jax.experimental import pallas as pl
from jax.experimental.pallas import tpu as pltpu


_NSEM = 8  # DMA semaphores, round-robined across the per-token row copies.


def _round_up(n, m):
    return ((n + m - 1) // m) * m


def _embedding_gather_kernel(ids_ref, w_hbm, o_ref, row_buf, sems):
    # ids_ref : (n_pad,) int32 in SMEM (scalar-prefetched token ids)
    # w_hbm   : (V, D) weight table, left in HBM (pl.ANY), DMA'd row by row
    # o_ref   : (TB, D) output tile in VMEM
    # row_buf : (TB, D) VMEM scratch the row DMAs land in
    # sems    : (_NSEM,) DMA completion semaphores
    tb = o_ref.shape[0]
    base = pl.program_id(0) * tb

    def _start(j, carry):
        row = ids_ref[base + j]
        pltpu.make_async_copy(
            w_hbm.at[pl.ds(row, 1), :],
            row_buf.at[pl.ds(j, 1), :],
            sems.at[j % _NSEM],
        ).start()
        return carry

    # Issue all TB row gathers first so they are all in flight...
    lax.fori_loop(0, tb, _start, 0)

    def _wait(j, carry):
        # Same-shaped descriptor: only the semaphore / byte count matter for the wait.
        pltpu.make_async_copy(
            w_hbm.at[pl.ds(0, 1), :],
            row_buf.at[pl.ds(j, 1), :],
            sems.at[j % _NSEM],
        ).wait()
        return carry

    # ...then drain them. After this loop every row of row_buf is valid.
    lax.fori_loop(0, tb, _wait, 0)

    # Single lane-dense store of the gathered block.
    o_ref[...] = row_buf[...]


@functools.partial(jax.jit, static_argnames=("token_block",))
def embedding_forward(x, weight, *, token_block=256):
    """x: integer token ids, any shape. weight: (V, D). Returns x.shape + (D,)."""
    orig_shape = x.shape
    V, D = weight.shape

    ids_flat = x.reshape(-1).astype(jnp.int32)
    n = ids_flat.shape[0]

    # TODO(synk): PyTorch nn.Embedding raises on out-of-range ids; here they are clamped
    # to [0, V-1] (also keeps the HBM row DMA in bounds).
    ids_flat = jnp.clip(ids_flat, 0, V - 1)

    # Token tile: large enough to amortize per-grid-step pipeline overhead and keep the
    # output store lane-dense, but no bigger than the (8-aligned) problem for tiny inputs.
    tb = max(8, min(token_block, _round_up(n, 8)))
    n_pad = _round_up(n, tb)
    # Padded tail ids gather row 0 and are sliced off afterwards (tiny wasted DMA work).
    ids_padded = jnp.pad(ids_flat, (0, n_pad - n))

    grid = (n_pad // tb,)

    out = pl.pallas_call(
        _embedding_gather_kernel,
        out_shape=jax.ShapeDtypeStruct((n_pad, D), weight.dtype),
        grid_spec=pltpu.PrefetchScalarGridSpec(
            num_scalar_prefetch=1,               # ids -> SMEM
            grid=grid,
            in_specs=[
                pl.BlockSpec(memory_space=pl.ANY),   # weight stays in HBM
            ],
            out_specs=pl.BlockSpec((tb, D), lambda i, ids: (i, 0)),
            scratch_shapes=[
                pltpu.VMEM((tb, D), weight.dtype),
                pltpu.SemaphoreType.DMA((_NSEM,)),
            ],
        ),
        compiler_params=pltpu.CompilerParams(
            dimension_semantics=("parallel",),   # shards token blocks across TCs (v7x)
        ),
    )(ids_padded, weight)

    return out[:n].reshape(*orig_shape, D)


if __name__ == "__main__":
    # Module config (small, synthetic): vocab=64, embedding_dim=128; ids of shape (2, 8).
    num_embeddings = 64
    embedding_dim = 128
    B, S = 2, 8

    key = jax.random.PRNGKey(0)
    k_w, k_x = jax.random.split(key)

    # Deterministic init matching nn.init.normal_ (standard normal).
    weight = jax.random.normal(k_w, (num_embeddings, embedding_dim), dtype=jnp.float32)
    x = jax.random.randint(k_x, (B, S), 0, num_embeddings, dtype=jnp.int32)

    out = embedding_forward(x, weight)
    out = jax.block_until_ready(out)

    ref = jnp.take(weight, x, axis=0)
    assert out.shape == (B, S, embedding_dim), out.shape
    assert out.dtype == weight.dtype, out.dtype
    assert jnp.allclose(out, ref, atol=0.0), "mismatch vs reference gather"

    print("KERNEL_OK")
</pallas_src>

<mosaic_0001>
module attributes {stable_mosaic.version = 11 : i64} {
  func.func @_embedding_gather_kernel(%arg0: i32, %arg1: memref<16xi32, #tpu.memory_space<smem>>, %arg2: memref<64x128xf32, #tpu.memory_space<any>>, %arg3: memref<16x128xf32, #tpu.memory_space<vmem>>, %arg4: memref<16x128xf32, #tpu.memory_space<vmem>>, %arg5: memref<8x!tpu.dma_semaphore, #tpu.memory_space<semaphore_mem>>) attributes {dimension_semantics = [#tpu.dimension_semantics<parallel>], iteration_bounds = array<i64: 1>, scalar_prefetch = 1 : i64, scratch_operands = 2 : i64, tpu.core_type = #tpu.core_type<tc>, window_params = [{}, {transform_indices = @transform_1, window_bounds = array<i64: 16, 128>}]} {
    %c16_i32 = arith.constant 16 : i32
    %0 = arith.muli %arg0, %c16_i32 : i32
    %c0_i32 = arith.constant 0 : i32
    %c16_i32_0 = arith.constant 16 : i32
    %1 = arith.addi %c0_i32, %c16_i32_0 : i32
    %c1_i32 = arith.constant 1 : i32
    scf.for %arg6 = %c0_i32 to %1 step %c1_i32  : i32 {
      %5 = arith.addi %0, %arg6 : i32
      %6 = arith.index_cast %5 : i32 to index
      %7 = memref.load %arg1[%6] : memref<16xi32, #tpu.memory_space<smem>>
      %c8_i32 = arith.constant 8 : i32
      %c0_i32_9 = arith.constant 0 : i32
      %8 = arith.cmpi eq, %c8_i32, %c0_i32_9 : i32
      %c1_i32_10 = arith.constant 1 : i32
      %9 = arith.select %8, %c1_i32_10, %c8_i32 : i32
      %10 = arith.remsi %arg6, %9 : i32
      %c0_i32_11 = arith.constant 0 : i32
      %11 = arith.cmpi ne, %10, %c0_i32_11 : i32
      %c0_i32_12 = arith.constant 0 : i32
      %12 = arith.cmpi slt, %10, %c0_i32_12 : i32
      %c0_i32_13 = arith.constant 0 : i32
      %13 = arith.cmpi slt, %9, %c0_i32_13 : i32
      %14 = arith.xori %12, %13 : i1
      %15 = arith.andi %14, %11 : i1
      %16 = arith.addi %10, %9 : i32
      %17 = arith.select %15, %16, %10 : i32
      %c0_i32_14 = arith.constant 0 : i32
      %18 = tpu.memref_slice %arg2[%7, %c0_i32_14] : memref<64x128xf32, #tpu.memory_space<any>> -> memref<1x128xf32, #tpu.memory_space<any>>
      %c0_i32_15 = arith.constant 0 : i32
      %19 = tpu.memref_slice %arg4[%arg6, %c0_i32_15] : memref<16x128xf32, #tpu.memory_space<vmem>> -> memref<1x128xf32, #tpu.memory_space<vmem>>
      %20 = tpu.memref_slice %arg5[%17] : memref<8x!tpu.dma_semaphore, #tpu.memory_space<semaphore_mem>> -> memref<1x!tpu.dma_semaphore, #tpu.memory_space<semaphore_mem>>
      %21 = tpu.memref_squeeze %20 : memref<1x!tpu.dma_semaphore, #tpu.memory_space<semaphore_mem>> -> memref<!tpu.dma_semaphore, #tpu.memory_space<semaphore_mem>>
      tpu.enqueue_dma source(%18 : memref<1x128xf32, #tpu.memory_space<any>>) target(%19 : memref<1x128xf32, #tpu.memory_space<vmem>>) target_semaphore(%21 : memref<!tpu.dma_semaphore, #tpu.memory_space<semaphore_mem>>)
    }
    %c16_i32_1 = arith.constant 16 : i32
    %c0_i32_2 = arith.constant 0 : i32
    %c16_i32_3 = arith.constant 16 : i32
    %2 = arith.addi %c0_i32_2, %c16_i32_3 : i32
    %c1_i32_4 = arith.constant 1 : i32
    scf.for %arg6 = %c0_i32_2 to %2 step %c1_i32_4  : i32 {
      %c8_i32 = arith.constant 8 : i32
      %c0_i32_9 = arith.constant 0 : i32
      %5 = arith.cmpi eq, %c8_i32, %c0_i32_9 : i32
      %c1_i32_10 = arith.constant 1 : i32
      %6 = arith.select %5, %c1_i32_10, %c8_i32 : i32
      %7 = arith.remsi %arg6, %6 : i32
      %c0_i32_11 = arith.constant 0 : i32
      %8 = arith.cmpi ne, %7, %c0_i32_11 : i32
      %c0_i32_12 = arith.constant 0 : i32
      %9 = arith.cmpi slt, %7, %c0_i32_12 : i32
      %c0_i32_13 = arith.constant 0 : i32
      %10 = arith.cmpi slt, %6, %c0_i32_13 : i32
      %11 = arith.xori %9, %10 : i1
      %12 = arith.andi %11, %8 : i1
      %13 = arith.addi %7, %6 : i32
      %14 = arith.select %12, %13, %7 : i32
      %c0_i32_14 = arith.constant 0 : i32
      %c0_i32_15 = arith.constant 0 : i32
      %15 = tpu.memref_slice %arg2[%c0_i32_14, %c0_i32_15] : memref<64x128xf32, #tpu.memory_space<any>> -> memref<1x128xf32, #tpu.memory_space<any>>
      %c0_i32_16 = arith.constant 0 : i32
      %16 = tpu.memref_slice %arg4[%arg6, %c0_i32_16] : memref<16x128xf32, #tpu.memory_space<vmem>> -> memref<1x128xf32, #tpu.memory_space<vmem>>
      %17 = tpu.memref_slice %arg5[%14] : memref<8x!tpu.dma_semaphore, #tpu.memory_space<semaphore_mem>> -> memref<1x!tpu.dma_semaphore, #tpu.memory_space<semaphore_mem>>
      %18 = tpu.memref_squeeze %17 : memref<1x!tpu.dma_semaphore, #tpu.memory_space<semaphore_mem>> -> memref<!tpu.dma_semaphore, #tpu.memory_space<semaphore_mem>>
      tpu.wait_dma2 semaphore(%18 : memref<!tpu.dma_semaphore, #tpu.memory_space<semaphore_mem>>) src(%15 : memref<1x128xf32, #tpu.memory_space<any>>) dst(%16 : memref<1x128xf32, #tpu.memory_space<vmem>>)
    }
    %c16_i32_5 = arith.constant 16 : i32
    %c0 = arith.constant 0 : index
    %c0_6 = arith.constant 0 : index
    %3 = vector.load %arg4[%c0, %c0_6] : memref<16x128xf32, #tpu.memory_space<vmem>>, vector<16x128xf32>
    %c0_7 = arith.constant 0 : index
    %c0_8 = arith.constant 0 : index
    %4 = vector.load %arg3[%c0_7, %c0_8] : memref<16x128xf32, #tpu.memory_space<vmem>>, vector<16x128xf32>
    tpu.vector_store %arg3[%c0_7, %c0_8], %3 {strides = array<i32>} : memref<16x128xf32, #tpu.memory_space<vmem>>, vector<16x128xf32>,
    return
  }
  func.func @transform_1(%arg0: i32, %arg1: memref<16xi32, #tpu.memory_space<smem>>) -> (i32, i32) {
    %c0_i32 = arith.constant 0 : i32
    %c0_i32_0 = arith.constant 0 : i32
    return %arg0, %c0_i32 : i32, i32
  }
}

</mosaic_0001>

<bundles_post_ra>
// kernel: embedding_forward.1
= control target key start
LH: loop header
LB: loop body
LE: loop exit
PB: predicated region body
PF: predicated region fallthrough
CT: control target
= control target key end

     0   :  { %s334_s0 = inlined_call_operand.vmem [shape: s32[16], index: 0, kind: input, shape index: {}]   ;;  %s335_s1 = inlined_call_operand.hbm [shape: f32[64,128], index: 1, kind: input, shape index: {}]   ;;  %s336_s2 = inlined_call_operand.hbm [shape: f32[16,128], index: 2, kind: output, shape index: {}]  }
   0x1   :  { %s7_s11 = sshll.u32 %s334_s0, 4  ;;  %s8_s11 = int_to_ptr.vmem [resolvable:$true] %s7_s11 }
   0x2   :  { %s197_s12 = scalar_lea.vmem %s8_s11, 16  ;;  %p202_p1 = scmp.lt.s32.totalorder %s8_s11, %s8_s11 }
   0x3   :  { %p198_p0 = scmp.ne.s32.totalorder %s8_s11, %s197_s12  ;;  %p203_p2 = scmp.lt.s32.totalorder %s197_s12, %s197_s12 }
   0x5   :  { %p204_p3 = por %p203_p2, %p202_p1 }
   0x7   :  { %p205_p4 = pnand %p204_p3, %p198_p0 }
   0x9   :  { %208 = shalt.err (!%p205_p4)  }
   0xa   :  { %s277_s13 = smov [#allocation5]  }
   0xb   :  { %10 = dma.vmem_to_smem %s8_s11, 16, %s277_s13, [#allocation4] }
   0xc   :  { %263 = dma.done.wait [#allocation4], 16 }
   0xd   :  { %264 = vsyncadd [#allocation4], 4294967280 }
   0xe   :  { %12 = sfence }
   0xf   :  { %13 = vsyncpa [#allocation7], 0  ;;  %s300_s14 = smov 0  }
  0x10 LB: > { %s22_s0 = sld [smem:[#allocation5 + %s271_s14]]  ;;  %p23_p5 = scmp.lt.s32.totalorder %s271_s14, 0  ;;  %s271_s14 = sphi %s300_s14, %s20_s14  }
  0x11   : > { %s24_s15 = ssub.s32 0, %s271_s14  ;;  %s37_s19 = scalar_lea.vmem [#allocation2], %s271_s14 }
  0x12   : > { %s162_s16 = smin.u32 %s271_s14, %s24_s15  ;;  %s46_s20 = sshll.u32 %s37_s19, 4  ;;  %s47_s20 = int_to_ptr.vmem [resolvable:$true] %s46_s20 }
  0x13   : > { %s26_s17 = sand.u32 7, %s162_s16   ;;  %s211_s30 = scalar_lea.hbm %s335_s1, 1024 }
  0x14   : > { %s27_s18 = ssub.s32 0, %s26_s17 }
  0x15   : > { %s338_s18 = smov (!%p23_p5, %s27_s18), %s26_s17 }
  0x16   : > { %s165_s21 = sshll.u32 %s22_s0, 4  ;;  %p164_p6 = scmp.lt.s32.totalorder %s338_s18, 0 }
  0x17   : > { %s33_s22 = sadd.s32 8, %s338_s18  ;;  %s36_s25 = scalar_lea.hbm %s335_s1, %s165_s21 }
  0x18   : > { %s340_s22 = smov (!%p164_p6, %s33_s22), %s338_s18  ;;  %s209_s27 = scalar_lea.hbm %s36_s25, 16 }
  0x19   : > { %s38_s26 = scalar_lea.sflag [#allocation3], %s340_s22  ;;  %p210_p7 = scmp.ne.s32.totalorder %s36_s25, %s209_s27 }
  0x1a   : > { %p212_p8 = scmp.lt.u32.totalorder %s36_s25, %s335_s1  ;;  %p213_p9 = scmp.lt.u32.totalorder %s211_s30, %s209_s27 }
  0x1b   : > { %p215_p11 = scmp.lt.u32.totalorder %s209_s27, %s36_s25 }
  0x1c   : > { %p214_p10 = por %p213_p9, %p212_p8 }
  0x1e   : > { %p216_p12 = por %p215_p11, %p214_p10 }
  0x20   : > { %p217_p13 = pnand %p216_p12, %p210_p7 }
  0x22   : > { %220 = shalt.err (!%p217_p13)  }
  0x23   : > { %s221_s5 = scalar_lea.vmem %s47_s20, 16  ;;  %s278_s6 = smov [#allocation2]  }
  0x24   : > { %p222_p0 = scmp.ne.s32.totalorder %s47_s20, %s221_s5  ;;  %s223_s7 = sshll.u32 %s278_s6, 4  ;;  %s224_s7 = int_to_ptr.vmem [resolvable:$false] %s223_s7 }
  0x25   : > { %s225_s8 = scalar_lea.vmem %s224_s7, 256  ;;  %p226_p1 = scmp.lt.s32.totalorder %s47_s20, %s224_s7 }
  0x26   : > { %p227_p2 = scmp.lt.s32.totalorder %s225_s8, %s221_s5 }
  0x28   : > { %p228_p3 = por %p227_p2, %p226_p1 }
  0x2a   : > { %p229_p4 = pnand %p228_p3, %p222_p0 }
  0x2c   : > { %232 = shalt.err (!%p229_p4)  }
  0x2d   : > { %49 = dma.hbm_to_vmem [thread:$0]  %s36_s25, 16, %s47_s20, %s38_s26 }
  0x2e   : > { %s20_s14 = sadd.s32 1, %s271_s14  }
  0x2f   : > { %p17_p5 = scmp.ge.s32.totalorder %s20_s14, 16  }
  0x30   :  { %s273_s9 = smov (%p17_p5), 0  }
  0x31   :  { %19 = sbr.rel (!%p17_p5) target bundleno = 16 (0x10), region = 49 }
  0x38 LB: > { %p56_p6 = scmp.lt.s32.totalorder %s275_s9, 0  ;;  %s57_s10 = ssub.s32 0, %s275_s9  ;;  %s275_s9 = sphi %s273_s9, %s55_s9  }
  0x39   : > { %s166_s11 = smin.u32 %s275_s9, %s57_s10 }
  0x3a   : > { %s59_s12 = sand.u32 7, %s166_s11  }
  0x3b   : > { %s60_s13 = ssub.s32 0, %s59_s12 }
  0x3c   : > { %s342_s13 = smov (!%p56_p6, %s60_s13), %s59_s12 }
  0x3d   : > { %p168_p7 = scmp.lt.s32.totalorder %s342_s13, 0  ;;  %s66_s0 = sadd.s32 8, %s342_s13 }
  0x3f   : > { %s344_s0 = smov (!%p168_p7, %s66_s0), %s342_s13 }
  0x40   : > { %s68_s15 = scalar_lea.sflag [#allocation3], %s344_s0 }
  0x41   : > { %265 = dma.done.wait %s68_s15, 16 }
  0x42   : > { %266 = vsyncadd %s68_s15, 4294967280  ;;  %s55_s9 = sadd.s32 1, %s275_s9  }
  0x43   : > { %p52_p8 = scmp.ge.s32.totalorder %s55_s9, 16  }
  0x44   :  { %v72_v0 = vld [vmem:[#allocation2] sm:$0xff] (%p52_p8)  ;;  %v73_v1 = vld [vmem:[#allocation2 + $0x8] sm:$0xff] (%p52_p8)  ;;  %s279_s1 = smov (%p52_p8), [#allocation6]  }
  0x45   :  { %54 = sbr.rel (!%p52_p8) target bundleno = 56 (0x38), region = 60  ;;  %74 = vst [vmem:[#allocation6] sm:$0xff] (%p52_p8), %v72_v0  ;;  %75 = vst [vmem:[#allocation6 + $0x8] sm:$0xff] (%p52_p8), %v73_v1  ;;  %s81_s14 = sshll.u32 (%p52_p8), %s279_s1, 4  ;;  %s82_s14 = int_to_ptr.vmem [resolvable:$true] %s81_s14 }
  0x46   :  { %s233_s16 = scalar_lea.vmem (%p52_p8), %s82_s14, 256  ;;  %p238_p10 = scmp.lt.s32.totalorder (%p52_p8), %s82_s14, %s82_s14 }
  0x47   :  { %p234_p9 = scmp.ne.s32.totalorder (%p52_p8), %s82_s14, %s233_s16  ;;  %p239_p11 = scmp.lt.s32.totalorder (%p52_p8), %s233_s16, %s233_s16 }
  0x49   :  { %p240_p12 = por (%p52_p8), %p239_p11, %p238_p10 }
  0x4b   :  { %p241_p13 = pnand (%p52_p8), %p240_p12, %p234_p9 }
  0x4d   :  { %244 = shalt.err (!%p241_p13)
}
  0x4e   :  { %s245_s19 = scalar_lea.hbm %s336_s2, 256 }
  0x4f   :  { %p246_p0 = scmp.ne.s32.totalorder %s336_s2, %s245_s19  ;;  %p249_p1 = scmp.lt.u32.totalorder %s245_s19, %s336_s2 }
  0x51   :  { %p251_p2 = pnand %p249_p1, %p246_p0 }
  0x53   :  { %254 = shalt.err (!%p251_p2)
}
  0x54   :  { %s280_s24 = smov 128   ;;  %s281_s25 = smov 8  }
  0x55   :  { %87 = dma.vmem_to_hbm [thread:$0]  %s82_s14, 256, %s336_s2, [#allocation7], %s280_s24, %s280_s24, %s281_s25  }
  0x56   :  { %267 = dma.done.wait [#allocation7], 256  }
  0x57   :  { %268 = vsyncadd [#allocation7], 4294967040 }
  0x58   :  { %91 = vsyncpa [#allocation7], 1 }
  0x59   :  { %92 = vsyncmov [#allocation3] }
  0x5c   :  { %s93_s28 = vpop.sfrf %92 }
  0x5d   :  { %p169_p3 = scmp.ne.s32.totalorder %s93_s28, 0 }
  0x5f   :  { %97 = shalt.err (%p169_p3)  }
  0x60   :  { %99 = vsyncmov [#allocation3 + $0x1] }
  0x63   :  { %s100_s29 = vpop.sfrf %99 }
  0x64   :  { %p170_p4 = scmp.ne.s32.totalorder %s100_s29, 0 }
  0x66   :  { %104 = shalt.err (%p170_p4)  }
  0x67   :  { %106 = vsyncmov [#allocation3 + $0x2] }
  0x6a   :  { %s107_s30 = vpop.sfrf %106 }
  0x6b   :  { %p171_p5 = scmp.ne.s32.totalorder %s107_s30, 0 }
  0x6d   :  { %111 = shalt.err (%p171_p5)  }
  0x6e   :  { %113 = vsyncmov [#allocation3 + $0x3] }
  0x71   :  { %s114_s3 = vpop.sfrf %113 }
  0x72   :  { %p172_p6 = scmp.ne.s32.totalorder %s114_s3, 0 }
  0x74   :  { %118 = shalt.err (%p172_p6)  }
  0x75   :  { %120 = vsyncmov [#allocation3 + $0x4] }
  0x78   :  { %s121_s2 = vpop.sfrf %120 }
  0x79   :  { %p173_p7 = scmp.ne.s32.totalorder %s121_s2, 0 }
  0x7b   :  { %125 = shalt.err (%p173_p7)  }
  0x7c   :  { %127 = vsyncmov [#allocation3 + $0x5] }
  0x7f   :  { %s128_s4 = vpop.sfrf %127 }
  0x80   :  { %p174_p8 = scmp.ne.s32.totalorder %s128_s4, 0 }
  0x82   :  { %132 = shalt.err (%p174_p8)  }
  0x83   :  { %134 = vsyncmov [#allocation3 + $0x6] }
  0x86   :  { %s135_s5 = vpop.sfrf %134 }
  0x87   :  { %p175_p9 = scmp.ne.s32.totalorder %s135_s5, 0 }
  0x89   :  { %139 = shalt.err (%p175_p9)  }
  0x8a   :  { %141 = vsyncmov [#allocation3 + $0x7] }
  0x8d   :  { %s142_s6 = vpop.sfrf %141 }
  0x8e   :  { %p176_p10 = scmp.ne.s32.totalorder %s142_s6, 0 }
  0x90   :  { %146 = shalt.err (%p176_p10)  }

</bundles_post_ra>
